<compile_context>
chip_gen: v7x
topology: tpu7x:2x2x1
jax: 0.10.0
libtpu: 0.0.40
codegen_flags: <defaults>
</compile_context>

<pallas_src>
import jax
import jax.numpy as jnp
from jax.experimental import pallas as pl
from jax.experimental.pallas import tpu as pltpu


# ----------------------------------------------------------------------------
# Kernel
# ----------------------------------------------------------------------------
def _mlp_decoder_kernel(x_ref, wt_ref, b_ref, o_ref):
    # One MXU matmul per (tm, tn) tile with f32 accumulation; bias + ReLU fused;
    # single lane-dense store in the output dtype.
    y = jnp.dot(x_ref[...], wt_ref[...], preferred_element_type=jnp.float32)
    y = y + b_ref[...].astype(jnp.float32)
    o_ref[...] = jnp.maximum(y, 0.0).astype(o_ref.dtype)


# ----------------------------------------------------------------------------
# Parameters & wrapper
# ----------------------------------------------------------------------------
def init_params(key, dim_in, dim_out, dtype=jnp.bfloat16):
    """PyTorch nn.Linear default init; weight stored pre-transposed (K, N),
    bias stored in its final (1, N) layout, both in the kernel operand dtype."""
    kw, kb = jax.random.split(key)
    bound = 1.0 / (dim_in ** 0.5)
    w = jax.random.uniform(kw, (dim_out, dim_in), jnp.float32, -bound, bound)
    b = jax.random.uniform(kb, (dim_out,), jnp.float32, -bound, bound)
    return {
        "wt": jnp.transpose(w).astype(dtype),        # (K, N)
        "b": b.reshape(1, dim_out).astype(dtype),    # (1, N)
    }


def _pick_tile(dim, pref, align):
    if dim <= pref:
        return dim                       # full extent: always a legal block dim
    return max(align, (pref // align) * align)


def mlp_decoder_apply(params, x, *, tm=512, tn=512):
    """relu(x @ W.T + b) for x of shape (..., dim_in)."""
    wt = params["wt"]                    # (K, N) pre-transposed
    b = params["b"]                      # (1, N)
    if wt.dtype != x.dtype:              # keep MXU operands in one dtype
        wt = wt.astype(x.dtype)
        b = b.astype(x.dtype)
    K, N = wt.shape

    orig_shape = x.shape
    x2 = x.reshape(-1, K)                # (M, K) -- metadata-only reshape
    M = x2.shape[0]

    tm_ = _pick_tile(M, tm, 8)
    tn_ = _pick_tile(N, tn, 128)

    # Double-buffered working-set estimate; shrink tiles if it would overflow a
    # conservative budget (v7x has only 64 MiB physical VMEM).
    def ws_bytes(tmb, tnb):
        return 2 * (tmb * K * x2.dtype.itemsize
                    + K * tnb * wt.dtype.itemsize
                    + tnb * b.dtype.itemsize
                    + tmb * tnb * x.dtype.itemsize)

    budget = 40 * 1024 * 1024
    while ws_bytes(tm_, tn_) > budget and (tm_ > 8 or tn_ > 128):
        if tm_ >= tn_ and tm_ > 8:
            tm_ = max(8, tm_ // 2)
        elif tn_ > 128:
            tn_ = max(128, tn_ // 2)
        else:
            tm_ = max(8, tm_ // 2)
    # TODO(synk): a dim_in so large that one (tm, K) + (K, tn) tile pair cannot
    # fit VMEM would need a K-tiled reduction path; not needed for this decoder.

    grid = (pl.cdiv(M, tm_), pl.cdiv(N, tn_))
    vmem_limit = int(min(max(ws_bytes(tm_, tn_) + (2 << 20), 16 << 20), 60 << 20))

    out = pl.pallas_call(
        _mlp_decoder_kernel,
        out_shape=jax.ShapeDtypeStruct((M, N), x.dtype),
        grid_spec=pltpu.PrefetchScalarGridSpec(
            num_scalar_prefetch=0,
            grid=grid,
            in_specs=[
                pl.BlockSpec((tm_, K), lambda i, j: (i, 0)),   # activations
                pl.BlockSpec((K, tn_), lambda i, j: (0, j)),   # W^T (resident if one N block)
                pl.BlockSpec((1, tn_), lambda i, j: (0, j)),   # bias
            ],
            out_specs=pl.BlockSpec((tm_, tn_), lambda i, j: (i, j)),
        ),
        compiler_params=pltpu.CompilerParams(
            dimension_semantics=("parallel", "parallel"),
            vmem_limit_bytes=vmem_limit),
    )(x2, wt, b)

    return out.reshape(*orig_shape[:-1], N)


# ----------------------------------------------------------------------------
# Self-test
# ----------------------------------------------------------------------------
if __name__ == "__main__":
    key = jax.random.PRNGKey(0)
    k_x, k_p, k_x2, k_p2 = jax.random.split(key, 4)

    # Case 1: small bf16 decoder (single-block grid): batch=2, seq=16,
    # dim_in=32, dim_out=64.
    dim_in, dim_out = 32, 64
    params = init_params(k_p, dim_in, dim_out, dtype=jnp.bfloat16)
    x = jax.random.normal(k_x, (2, 16, dim_in), dtype=jnp.bfloat16)
    y = jax.block_until_ready(mlp_decoder_apply(params, x))
    ref = jnp.maximum(
        x.reshape(-1, dim_in).astype(jnp.float32) @ params["wt"].astype(jnp.float32)
        + params["b"].astype(jnp.float32), 0.0
    ).reshape(2, 16, dim_out)
    assert y.shape == (2, 16, dim_out) and y.dtype == jnp.bfloat16
    assert bool(jnp.all(jnp.isfinite(y.astype(jnp.float32))))
    err = float(jnp.max(jnp.abs(y.astype(jnp.float32) - ref)))
    assert err < 5e-2, err

    # Case 2: larger f32 decoder (exercises the multi-block (M, N) grid and
    # partial edge tiles along N without any padding/slicing).
    dim_in2, dim_out2 = 1024, 768
    params2 = init_params(k_p2, dim_in2, dim_out2, dtype=jnp.float32)
    x2 = jax.random.normal(k_x2, (1024, dim_in2), dtype=jnp.float32)
    y2 = jax.block_until_ready(mlp_decoder_apply(params2, x2))
    ref2 = jnp.maximum(x2 @ params2["wt"] + params2["b"], 0.0)
    assert y2.shape == (1024, dim_out2) and y2.dtype == jnp.float32
    assert bool(jnp.all(jnp.isfinite(y2)))
    assert bool(jnp.allclose(y2, ref2, atol=5e-3, rtol=5e-3)), \
        float(jnp.max(jnp.abs(y2 - ref2)))

    print("KERNEL_OK")
</pallas_src>

<mosaic_0001>
module attributes {stable_mosaic.version = 11 : i64} {
  func.func @_mlp_decoder_kernel(%arg0: i32, %arg1: i32, %arg2: memref<32x32xbf16, #tpu.memory_space<vmem>>, %arg3: memref<32x64xbf16, #tpu.memory_space<vmem>>, %arg4: memref<1x64xbf16, #tpu.memory_space<vmem>>, %arg5: memref<32x64xbf16, #tpu.memory_space<vmem>>) attributes {dimension_semantics = [#tpu.dimension_semantics<parallel>, #tpu.dimension_semantics<parallel>], iteration_bounds = array<i64: 1, 1>, scalar_prefetch = 0 : i64, scratch_operands = 0 : i64, tpu.core_type = #tpu.core_type<tc>, window_params = [{transform_indices = @transform_0, window_bounds = array<i64: 32, 32>}, {transform_indices = @transform_1, window_bounds = array<i64: 32, 64>}, {transform_indices = @transform_2, window_bounds = array<i64: 1, 64>}, {transform_indices = @transform_3, window_bounds = array<i64: 32, 64>}]} {
    %c0 = arith.constant 0 : index
    %c0_0 = arith.constant 0 : index
    %0 = vector.load %arg2[%c0, %c0_0] : memref<32x32xbf16, #tpu.memory_space<vmem>>, vector<32x32xbf16>
    %c0_1 = arith.constant 0 : index
    %c0_2 = arith.constant 0 : index
    %1 = vector.load %arg3[%c0_1, %c0_2] : memref<32x64xbf16, #tpu.memory_space<vmem>>, vector<32x64xbf16>
    %cst = arith.constant dense<0.000000e+00> : vector<32x64xf32>
    %2 = tpu.matmul %0, %1, %cst {dimension_numbers = #tpu.dot_dimension_numbers<[1], [0], [0], [1], [0, 0, 1, 1], [], []>} : vector<32x32xbf16>, vector<32x64xbf16>, vector<32x64xf32> -> vector<32x64xf32>
    %c0_3 = arith.constant 0 : index
    %c0_4 = arith.constant 0 : index
    %3 = vector.load %arg4[%c0_3, %c0_4] : memref<1x64xbf16, #tpu.memory_space<vmem>>, vector<1x64xbf16>
    %4 = arith.extf %3 : vector<1x64xbf16> to vector<1x64xf32>
    %5 = vector.broadcast %4 : vector<1x64xf32> to vector<32x64xf32>
    %6 = arith.addf %2, %5 : vector<32x64xf32>
    %cst_5 = arith.constant 0.000000e+00 : f32
    %7 = vector.broadcast %cst_5 : f32 to vector<32x64xf32>
    %8 = arith.maximumf %6, %7 : vector<32x64xf32>
    %9 = arith.truncf %8 : vector<32x64xf32> to vector<32x64xbf16>
    %c0_6 = arith.constant 0 : index
    %c0_7 = arith.constant 0 : index
    %10 = vector.load %arg5[%c0_6, %c0_7] : memref<32x64xbf16, #tpu.memory_space<vmem>>, vector<32x64xbf16>
    tpu.vector_store %arg5[%c0_6, %c0_7], %9 {strides = array<i32>} : memref<32x64xbf16, #tpu.memory_space<vmem>>, vector<32x64xbf16>,
    return
  }
  func.func @transform_0(%arg0: i32, %arg1: i32) -> (i32, i32) {
    %c0_i32 = arith.constant 0 : i32
    %c0_i32_0 = arith.constant 0 : i32
    return %arg0, %c0_i32 : i32, i32
  }
  func.func @transform_1(%arg0: i32, %arg1: i32) -> (i32, i32) {
    %c0_i32 = arith.constant 0 : i32
    %c0_i32_0 = arith.constant 0 : i32
    return %c0_i32, %arg1 : i32, i32
  }
  func.func @transform_2(%arg0: i32, %arg1: i32) -> (i32, i32) {
    %c0_i32 = arith.constant 0 : i32
    %c0_i32_0 = arith.constant 0 : i32
    return %c0_i32, %arg1 : i32, i32
  }
  func.func @transform_3(%arg0: i32, %arg1: i32) -> (i32, i32) {
    %c0_i32 = arith.constant 0 : i32
    return %arg0, %arg1 : i32, i32
  }
}

</mosaic_0001>

<bundles_post_ra>
// kernel: tpu_custom_call.1
= control target key start
LH: loop header
LB: loop body
LE: loop exit
PB: predicated region body
PF: predicated region fallthrough
CT: control target
= control target key end

     0   :  { %8 = vsyncpa [#allocation3], 0  ;;  %s359_s0 = inlined_call_operand.hbm [shape: bf16[32,32], index: 0, kind: input, shape index: {}]   ;;  %s360_s1 = inlined_call_operand.hbm [shape: bf16[32,64], index: 1, kind: input, shape index: {}]   ;;  %s361_s2 = inlined_call_operand.vmem [shape: bf16[1,64], index: 2, kind: input, shape index: {}]   ;;  %s362_s3 = inlined_call_operand.hbm [shape: bf16[32,64], index: 3, kind: output, shape index: {}]  }
   0x1   :  { %9 = vsyncpa [#allocation6], 0 }
   0x2   :  { %10 = vsyncpa [#allocation4], 0  ;;  %s286_s12 = smov [#allocation2]   ;;  %s214_s16 = scalar_lea.hbm %s359_s0, 256 }
   0x3   :  { %s16_s13 = sshll.u32 %s286_s12, 4  ;;  %p215_p0 = scmp.ne.s32.totalorder %s359_s0, %s214_s16  ;;  %s17_s13 = int_to_ptr.vmem [resolvable:$true] %s16_s13 }
   0x4   :  { %p218_p1 = scmp.lt.u32.totalorder %s214_s16, %s359_s0 }
   0x6   :  { %p220_p2 = pnand %p218_p1, %p215_p0 }
   0x8   :  { %223 = shalt.err (!%p220_p2)
}
   0x9   :  { %s224_s21 = scalar_lea.vmem %s17_s13, 256  ;;  %p229_p4 = scmp.lt.s32.totalorder %s17_s13, %s17_s13 }
   0xa   :  { %p225_p3 = scmp.ne.s32.totalorder %s17_s13, %s224_s21  ;;  %p230_p5 = scmp.lt.s32.totalorder %s224_s21, %s224_s21 }
   0xc   :  { %p231_p6 = por %p230_p5, %p229_p4 }
   0xe   :  { %p232_p7 = pnand %p231_p6, %p225_p3 }
  0x10   :  { %235 = shalt.err (!%p232_p7)
}
  0x11   :  { %s287_s22 = smov 64   ;;  %s288_s23 = smov 4  }
  0x12   :  { %22 = dma.hbm_to_vmem [thread:$0]  %s359_s0, 256, %s17_s13, [#allocation3], %s287_s22, %s287_s22, %s288_s23  }
  0x13   :  { %s289_s26 = smov [#allocation5]   ;;  %s236_s30 = scalar_lea.hbm %s360_s1, 256 }
  0x14   :  { %s28_s27 = sshll.u32 %s289_s26, 4  ;;  %p237_p8 = scmp.ne.s32.totalorder %s360_s1, %s236_s30  ;;  %s29_s27 = int_to_ptr.vmem [resolvable:$true] %s28_s27 }
  0x15   :  { %p240_p9 = scmp.lt.u32.totalorder %s236_s30, %s360_s1 }
  0x17   :  { %p242_p10 = pnand %p240_p9, %p237_p8 }
  0x19   :  { %245 = shalt.err (!%p242_p10)
}
  0x1a   :  { %s246_s8 = scalar_lea.vmem %s29_s27, 256  ;;  %p251_p12 = scmp.lt.s32.totalorder %s29_s27, %s29_s27 }
  0x1b   :  { %p247_p11 = scmp.ne.s32.totalorder %s29_s27, %s246_s8  ;;  %p252_p13 = scmp.lt.s32.totalorder %s246_s8, %s246_s8 }
  0x1d   :  { %p253_p0 = por %p252_p13, %p251_p12 }
  0x1f   :  { %p254_p1 = pnand %p253_p0, %p247_p11 }
  0x21   :  { %257 = shalt.err (!%p254_p1)
}
  0x22   :  { %34 = dma.hbm_to_vmem [thread:$0]  %s360_s1, 256, %s29_s27, [#allocation6], %s287_s22, %s287_s22, %s288_s23  }
  0x23   :  { %280 = dma.done.wait [#allocation3], 256  }
  0x24   :  { %281 = vsyncadd [#allocation3], 4294967040 }
  0x25   :  { %282 = dma.done.wait [#allocation6], 256  }
  0x26   :  { %283 = vsyncadd [#allocation6], 4294967040  ;;  %v210_v0 = vld [vmem:[#allocation5] sm:$0xff]   ;;  %v211_v1 = vld [vmem:[#allocation5 + $0x8] sm:$0xff]   ;;  %vm80_vm0 = vcmask 261120   ;;  %v54_v4 = vlaneseq  ;;  %vm156_vm1 = vcmask 519168  }
  0x27   :  { %197 = vmatprep.subr.bf16.mxu0 %v210_v0  ;;  %v212_v2 = vld [vmem:[#allocation2] sm:$0xff]   ;;  %v213_v3 = vld [vmem:[#allocation2 + $0x8] sm:$0xff]   ;;  %s290_s1 = smov [#allocation7]  }
  0x28   :  { %198 = vmatpush3.bf16.msra.mxu0 %v210_v0  ;;  %201 = vmatprep.mubr.msk.bf16.mxu0 %vm80_vm0, %v212_v2  ;;  %v55_v5 = vshrl.u32 %v54_v4, 7  ;;  %v52_v6 = vld [vmem:[%s361_s2] sm:$0x1]  ;;  %s166_s12 = sshll.u32 %s290_s1, 4  ;;  %s167_s12 = int_to_ptr.vmem [resolvable:$true] %s166_s12 }
  0x29   :  { %199 = vmatprep.subr.bf16.mxu0 %v211_v1  ;;  %v53_v7 = vunpack.c.l.bf16 %v52_v6  ;;  %s258_s2 = scalar_lea.vmem %s167_s12, 256  ;;  %p263_p3 = scmp.lt.s32.totalorder %s167_s12, %s167_s12 }
  0x2a   :  { %v56_v8 = vsub.s32 0, %v55_v5  ;;  %p259_p2 = scmp.ne.s32.totalorder %s167_s12, %s258_s2  ;;  %p264_p4 = scmp.lt.s32.totalorder %s258_s2, %s258_s2 }
  0x2c   :  { %200 = vmatpush3.bf16.msra.mxu0 %v211_v1  ;;  %v57_v9 = vrot.slane %v53_v7, %v56_v8  ;;  %p265_p5 = por %p264_p4, %p263_p3 }
  0x2e   :  { %p266_p6 = pnand %p265_p5, %p259_p2 }
  0x2f   :  { %202 = vmatmul.mubr.msk.bf16.vlgmr.msra.gmra.mrb[0].mxu0 %vm80_vm0, %v213_v3 }
 0x102   :  { %v203_v10 = vpop.f32.mrb[0].mxu0 }
 0x103   :  { %v130_v11 = vadd.f32 %v203_v10, %v57_v9  ;;  %v121_v12 = vpop.f32.mrb[1].mxu0 }
 0x104   :  { %v122_v13 = vadd.f32 %v121_v12, %v57_v9  ;;  %v204_v14 = vpop.f32.mrb[2].mxu0 }
 0x105   :  { %v138_v15 = vmax.f32 %v130_v11, 0.0  ;;  %v133_v16 = vadd.f32 %v204_v14, %v57_v9  ;;  %v124_v17 = vpop.f32.mrb[3].mxu0 }
 0x106   :  { %v136_v18 = vmax.f32 %v122_v13, 0.0  ;;  %v125_v19 = vadd.f32 %v124_v17, %v57_v9 }
 0x107   :  { %v191_v20 = vpack.c.bf16 %v138_v15, %v138_v15  ;;  %v139_v21 = vmax.f32 %v133_v16, 0.0 }
 0x108   :  { %v189_v22 = vpack.c.bf16 %v136_v18, %v136_v18  ;;  %v137_v23 = vmax.f32 %v125_v19, 0.0 }
 0x109   :  { %159 = vst.msk [vmem:[#allocation7 + $0x8] sm:$0xf] %vm156_vm1, %v191_v20  ;;  %v192_v24 = vpack.c.bf16 %v139_v21, %v139_v21 }
 0x10a   :  { %157 = vst.msk [vmem:[#allocation7] sm:$0xf] %vm156_vm1, %v189_v22  ;;  %v190_v25 = vpack.c.bf16 %v137_v23, %v137_v23 }
 0x10b   :  { %160 = vst.msk [vmem:[#allocation7 + $0xc] sm:$0xf] %vm156_vm1, %v192_v24 }
 0x10c   :  { %158 = vst.msk [vmem:[#allocation7 + $0x4] sm:$0xf] %vm156_vm1, %v190_v25 }
 0x10d   :  { %269 = shalt.err (!%p266_p6)
}
 0x10e   :  { %s270_s15 = scalar_lea.hbm %s362_s3, 256 }
 0x10f   :  { %p271_p7 = scmp.ne.s32.totalorder %s362_s3, %s270_s15  ;;  %p274_p8 = scmp.lt.u32.totalorder %s270_s15, %s362_s3 }
 0x111   :  { %p276_p9 = pnand %p274_p8, %p271_p7 }
 0x113   :  { %279 = shalt.err (!%p276_p9)
}
 0x114   :  { %172 = dma.vmem_to_hbm [thread:$0]  %s167_s12, 256, %s362_s3, [#allocation4], %s287_s22, %s287_s22, %s288_s23  }
 0x115   :  { %284 = dma.done.wait [#allocation4], 256  }
 0x116   :  { %285 = vsyncadd [#allocation4], 4294967040 }
 0x117   :  { %176 = vsyncpa [#allocation3], 1 }
 0x118   :  { %177 = vsyncpa [#allocation6], 1 }
 0x119   :  { %178 = vsyncpa [#allocation4], 1 }

</bundles_post_ra>
